<compile_context>
chip_gen: v5e
topology: v5e:2x2
jax: 0.10.0
libtpu: 0.0.40
codegen_flags: <defaults>
</compile_context>

<pallas_src>
from functools import partial

import numpy as np
import jax
import jax.numpy as jnp
from jax.experimental import pallas as pl
from jax.experimental.pallas import tpu as pltpu

USE_BUGGY_ZERO_KERNELS = False


# ----------------------------------------------------------------------------
# Constant iFFT basis (host-side, built once).
# ----------------------------------------------------------------------------
def get_ifft_kernels(nfft):
    """Deterministic re-implementation of _get_ifft_kernels (intended branch)."""
    nfft = int(nfft)
    assert nfft % 2 == 0
    n_freq = nfft // 2
    t = np.arange(nfft, dtype=np.float64)[:, None]
    f = np.arange(n_freq + 1, dtype=np.float64)[None, :]
    # NB: the original formula divides by 1024.0 regardless of nfft; keep that.
    kernels = np.exp(1j * (2.0 * np.pi * t * f) / 1024.0)  # (nfft, n_freq + 1)
    if USE_BUGGY_ZERO_KERNELS:
        kernels = np.zeros((nfft, n_freq + 1)) * 1j
    ac_cof = float(np.real(kernels[0, 0]))
    kernels = 2.0 * kernels[:, 1:]
    kernels[:, -1] = kernels[:, -1] / 2.0
    real_k = np.real(kernels)          # (nfft, n_freq) float64
    imag_k = np.imag(kernels)          # (nfft, n_freq) float64
    return real_k, imag_k, ac_cof


# ----------------------------------------------------------------------------
# Pallas kernel: two MXU dots accumulated in f32 + ac broadcast-add epilogue.
# ----------------------------------------------------------------------------
def _ifft_kernel(m_ref, p_ref, ac_ref, wr_ref, wi_ref, out_ref, *, ac_scale):
    # m_ref/p_ref : (1, K, W)   ac_ref : (1, 1, W)
    # wr_ref/wi_ref : (TN, K)   (scale 1/nfft and the minus sign already folded)
    # out_ref : (1, TN, W)
    acc = jnp.dot(wr_ref[...], m_ref[0], preferred_element_type=jnp.float32)
    acc = acc + jnp.dot(wi_ref[...], p_ref[0], preferred_element_type=jnp.float32)
    acc = acc + ac_ref[0].astype(jnp.float32) * ac_scale        # (1, W) bcast
    out_ref[0] = acc.astype(out_ref.dtype)


# ----------------------------------------------------------------------------
# VMEM budgeting / tiling helpers (generation aware).
# ----------------------------------------------------------------------------
def _vmem_budget_bytes():
    try:
        info = pltpu.get_tpu_info()
        cap = int(getattr(info, "vmem_capacity_bytes", 0)) or (64 << 20)
    except Exception:
        cap = 64 << 20                      # conservative (v7x physical VMEM)
    # leave headroom for Mosaic internal scratch: ~40 MiB v7x, ~80 MiB v5e/v6e
    return int(cap * 5 // 8)


def _pick_n_tile(N, K, B, W, in_bytes, budget):
    """Largest TN (TN == N, or TN | N with TN % 8 == 0) whose double-buffered
    blocks fit the VMEM budget; split further if needed so the grid has >= 2
    parallel steps (both v7x TensorCores busy)."""
    act = 2 * 2 * K * W * in_bytes + 2 * W * 4            # magn + phase + ac

    def need(tn):
        return act + 2 * 2 * tn * K * in_bytes + 2 * tn * W * 4

    cands = [N] + [d for d in range(8 * (N // 8), 0, -8) if d < N and N % d == 0]
    tn = next((c for c in cands if need(c) <= budget), cands[-1])
    if B * (N // tn) < 2:                                  # megacore occupancy
        for c in cands:
            if c < tn and N // c >= 2:
                tn = c
                break
    return tn


# ----------------------------------------------------------------------------
# Module-like wrapper (weights built & cached once at init).
# ----------------------------------------------------------------------------
class IFFT:
    def __init__(self, nfft=1024, *, use_bf16=False, xla_fast_path_elems=0):
        assert nfft % 2 == 0
        self.nfft = int(nfft)
        self.n_freq = self.nfft // 2
        real_k, imag_k, self.ac_cof = get_ifft_kernels(self.nfft)
        inv = 1.0 / float(self.nfft)
        wdt = jnp.bfloat16 if use_bf16 else jnp.float32
        # sign and 1/nfft scale folded into the constant weights (built once).
        self.w_real = jnp.asarray(real_k * inv, dtype=wdt)    # (nfft, n_freq)
        self.w_imag = jnp.asarray(-imag_k * inv, dtype=wdt)   # (nfft, n_freq)
        self.ac_scale = float(self.ac_cof) * inv
        self.use_bf16 = use_bf16
        # >0 enables the tiny-problem XLA einsum fast path (review item:
        # skip pallas_call launch overhead when B*nfft*W is small).
        self.xla_fast_path_elems = int(xla_fast_path_elems)

    def __call__(self, magn, phase, ac=None):
        B, C, K, W = magn.shape
        assert C == 1 and K == self.n_freq and phase.shape == magn.shape
        N = self.nfft
        out_dtype = magn.dtype

        # Channel-squeeze reshapes are free (contiguous NCHW, C == 1): no
        # transpose / concat / pad HBM passes around the kernel.
        x_m = magn.reshape(B, K, W)
        x_p = phase.reshape(B, K, W)
        if ac is None:
            ac_rows = jnp.zeros((B, 1, W), jnp.float32)
        else:
            ac_rows = jnp.broadcast_to(ac, (B, 1, 1, W)).reshape(B, 1, W)
            ac_rows = ac_rows.astype(jnp.float32)

        if self.use_bf16:
            x_m = x_m.astype(jnp.bfloat16)
            x_p = x_p.astype(jnp.bfloat16)

        if 0 < self.xla_fast_path_elems and B * N * W <= self.xla_fast_path_elems:
            out = (jnp.einsum('nk,bkw->bnw', self.w_real, x_m,
                              preferred_element_type=jnp.float32)
                   + jnp.einsum('nk,bkw->bnw', self.w_imag, x_p,
                                preferred_element_type=jnp.float32)
                   + ac_rows * self.ac_scale).astype(out_dtype)
            return out.reshape(B, N, 1, W)

        in_bytes = 2 if self.use_bf16 else 4
        budget = _vmem_budget_bytes()
        TN = _pick_n_tile(N, K, B, W, in_bytes, budget)
        n_tiles = N // TN

        vmem_needed = (2 * 2 * K * W * in_bytes        # magn + phase (dbl buf)
                       + 2 * W * 4                     # ac
                       + 2 * 2 * TN * K * in_bytes     # wr + wi (dbl buf)
                       + 2 * TN * W * 4)               # out (dbl buf)
        vmem_limit = int(min(budget, max(vmem_needed + (8 << 20), 32 << 20)))

        kernel = partial(_ifft_kernel, ac_scale=self.ac_scale)

        out = pl.pallas_call(
            kernel,
            out_shape=jax.ShapeDtypeStruct((B, N, W), out_dtype),
            grid_spec=pltpu.PrefetchScalarGridSpec(
                num_scalar_prefetch=0,
                # n-tiles outer, batch inner: weight blocks are DMA'd once,
                # per-batch activations re-read only n_tiles (usually 1) times.
                grid=(n_tiles, B),
                in_specs=[
                    pl.BlockSpec((1, K, W), lambda n, b: (b, 0, 0)),   # magn
                    pl.BlockSpec((1, K, W), lambda n, b: (b, 0, 0)),   # phase
                    pl.BlockSpec((1, 1, W), lambda n, b: (b, 0, 0)),   # ac
                    pl.BlockSpec((TN, K),   lambda n, b: (n, 0)),      # +Wr/nfft
                    pl.BlockSpec((TN, K),   lambda n, b: (n, 0)),      # -Wi/nfft
                ],
                out_specs=pl.BlockSpec((1, TN, W), lambda n, b: (b, n, 0)),
            ),
            compiler_params=pltpu.CompilerParams(
                dimension_semantics=("parallel", "parallel"),
                vmem_limit_bytes=vmem_limit),
            cost_estimate=pl.CostEstimate(
                flops=4 * B * N * K * W,
                transcendentals=0,
                bytes_accessed=(2 * B * K * W + 2 * N * K) * in_bytes
                               + (B * W + B * N * W) * 4),
        )(x_m, x_p, ac_rows, self.w_real, self.w_imag)

        # (B, nfft, W) -> (B, nfft, 1, W): free reshape, no transpose pass.
        return out.reshape(B, N, 1, W)


# ----------------------------------------------------------------------------
# Pure-JAX reference (mirrors the PyTorch module forward).
# ----------------------------------------------------------------------------
def ifft_reference(magn, phase, wr, wi, ac=None, *, nfft, ac_cof):
    wr = jnp.asarray(np.asarray(wr, np.float32))
    wi = jnp.asarray(np.asarray(wi, np.float32))
    out = (jnp.einsum('bckw,nk->bnw', magn, wr)
           - jnp.einsum('bckw,nk->bnw', phase, wi))[:, :, None, :]
    if ac is not None:
        out = out + ac * ac_cof
    return out / float(nfft)


if __name__ == "__main__":
    # small, module-consistent shapes: nfft=64 -> n_freq=32, batch=2, width=8
    nfft = 64
    n_freq = nfft // 2
    B, W = 2, 8

    module = IFFT(nfft)   # fast path disabled by default -> Pallas kernel runs

    key = jax.random.PRNGKey(0)
    k1, k2, k3 = jax.random.split(key, 3)
    magn = jax.random.normal(k1, (B, 1, n_freq, W), dtype=jnp.float32)
    phase = jax.random.normal(k2, (B, 1, n_freq, W), dtype=jnp.float32)
    ac = jax.random.normal(k3, (B, 1, 1, W), dtype=jnp.float32)

    out = jax.block_until_ready(module(magn, phase, ac))

    wr, wi, ac_cof = get_ifft_kernels(nfft)
    ref = ifft_reference(magn, phase, wr, wi, ac, nfft=nfft, ac_cof=ac_cof)
    assert out.shape == (B, nfft, 1, W), out.shape
    np.testing.assert_allclose(np.asarray(out), np.asarray(ref),
                               rtol=1e-5, atol=1e-5)

    # ac=None branch
    out2 = jax.block_until_ready(module(magn, phase))
    ref2 = ifft_reference(magn, phase, wr, wi, None, nfft=nfft, ac_cof=ac_cof)
    np.testing.assert_allclose(np.asarray(out2), np.asarray(ref2),
                               rtol=1e-5, atol=1e-5)

    print("KERNEL_OK")
</pallas_src>

<mosaic_0001>
module attributes {stable_mosaic.version = 11 : i64} {
  func.func @_ifft_kernel(%arg0: i32, %arg1: i32, %arg2: memref<1x32x8xf32, #tpu.memory_space<vmem>>, %arg3: memref<1x32x8xf32, #tpu.memory_space<vmem>>, %arg4: memref<1x1x8xf32, #tpu.memory_space<vmem>>, %arg5: memref<64x32xf32, #tpu.memory_space<vmem>>, %arg6: memref<64x32xf32, #tpu.memory_space<vmem>>, %arg7: memref<1x64x8xf32, #tpu.memory_space<vmem>>) attributes {dimension_semantics = [#tpu.dimension_semantics<parallel>, #tpu.dimension_semantics<parallel>], iteration_bounds = array<i64: 1, 2>, scalar_prefetch = 0 : i64, scratch_operands = 0 : i64, tpu.core_type = #tpu.core_type<tc>, window_params = [{transform_indices = @transform_0, window_bounds = array<i64: 1, 32, 8>}, {transform_indices = @transform_1, window_bounds = array<i64: 1, 32, 8>}, {transform_indices = @transform_2, window_bounds = array<i64: 1, 1, 8>}, {transform_indices = @transform_3, window_bounds = array<i64: 64, 32>}, {transform_indices = @transform_4, window_bounds = array<i64: 64, 32>}, {transform_indices = @transform_5, window_bounds = array<i64: 1, 64, 8>}]} {
    %c0 = arith.constant 0 : index
    %c0_0 = arith.constant 0 : index
    %0 = vector.load %arg5[%c0, %c0_0] : memref<64x32xf32, #tpu.memory_space<vmem>>, vector<64x32xf32>
    %c0_1 = arith.constant 0 : index
    %c0_2 = arith.constant 0 : index
    %c0_3 = arith.constant 0 : index
    %1 = vector.load %arg2[%c0_1, %c0_2, %c0_3] : memref<1x32x8xf32, #tpu.memory_space<vmem>>, vector<1x32x8xf32>
    %2 = vector.shape_cast %1 : vector<1x32x8xf32> to vector<32x8xf32>
    %cst = arith.constant dense<0.000000e+00> : vector<64x8xf32>
    %3 = tpu.matmul %0, %2, %cst {dimension_numbers = #tpu.dot_dimension_numbers<[1], [0], [0], [1], [0, 0, 1, 1], [], []>} : vector<64x32xf32>, vector<32x8xf32>, vector<64x8xf32> -> vector<64x8xf32>
    %c0_4 = arith.constant 0 : index
    %c0_5 = arith.constant 0 : index
    %4 = vector.load %arg6[%c0_4, %c0_5] : memref<64x32xf32, #tpu.memory_space<vmem>>, vector<64x32xf32>
    %c0_6 = arith.constant 0 : index
    %c0_7 = arith.constant 0 : index
    %c0_8 = arith.constant 0 : index
    %5 = vector.load %arg3[%c0_6, %c0_7, %c0_8] : memref<1x32x8xf32, #tpu.memory_space<vmem>>, vector<1x32x8xf32>
    %6 = vector.shape_cast %5 : vector<1x32x8xf32> to vector<32x8xf32>
    %cst_9 = arith.constant dense<0.000000e+00> : vector<64x8xf32>
    %7 = tpu.matmul %4, %6, %cst_9 {dimension_numbers = #tpu.dot_dimension_numbers<[1], [0], [0], [1], [0, 0, 1, 1], [], []>} : vector<64x32xf32>, vector<32x8xf32>, vector<64x8xf32> -> vector<64x8xf32>
    %8 = arith.addf %3, %7 : vector<64x8xf32>
    %c0_10 = arith.constant 0 : index
    %c0_11 = arith.constant 0 : index
    %c0_12 = arith.constant 0 : index
    %9 = vector.load %arg4[%c0_10, %c0_11, %c0_12] : memref<1x1x8xf32, #tpu.memory_space<vmem>>, vector<1x1x8xf32>
    %10 = vector.shape_cast %9 : vector<1x1x8xf32> to vector<1x8xf32>
    %cst_13 = arith.constant 1.562500e-02 : f32
    %11 = vector.broadcast %cst_13 : f32 to vector<1x8xf32>
    %12 = arith.mulf %10, %11 : vector<1x8xf32>
    %13 = vector.broadcast %12 : vector<1x8xf32> to vector<64x8xf32>
    %14 = arith.addf %8, %13 : vector<64x8xf32>
    %c0_14 = arith.constant 0 : index
    %c0_15 = arith.constant 0 : index
    %c0_16 = arith.constant 0 : index
    %15 = vector.load %arg7[%c0_14, %c0_15, %c0_16] : memref<1x64x8xf32, #tpu.memory_space<vmem>>, vector<1x64x8xf32>
    %16 = vector.shape_cast %15 : vector<1x64x8xf32> to vector<64x8xf32>
    %17 = vector.shape_cast %14 : vector<64x8xf32> to vector<1x64x8xf32>
    tpu.vector_store %arg7[%c0_14, %c0_15, %c0_16], %17 {strides = array<i32>} : memref<1x64x8xf32, #tpu.memory_space<vmem>>, vector<1x64x8xf32>,
    return
  }
  func.func @transform_0(%arg0: i32, %arg1: i32) -> (i32, i32, i32) {
    %c0_i32 = arith.constant 0 : i32
    %c0_i32_0 = arith.constant 0 : i32
    %c0_i32_1 = arith.constant 0 : i32
    return %arg1, %c0_i32, %c0_i32_0 : i32, i32, i32
  }
  func.func @transform_1(%arg0: i32, %arg1: i32) -> (i32, i32, i32) {
    %c0_i32 = arith.constant 0 : i32
    %c0_i32_0 = arith.constant 0 : i32
    %c0_i32_1 = arith.constant 0 : i32
    return %arg1, %c0_i32, %c0_i32_0 : i32, i32, i32
  }
  func.func @transform_2(%arg0: i32, %arg1: i32) -> (i32, i32, i32) {
    %c0_i32 = arith.constant 0 : i32
    %c0_i32_0 = arith.constant 0 : i32
    %c0_i32_1 = arith.constant 0 : i32
    return %arg1, %c0_i32, %c0_i32_0 : i32, i32, i32
  }
  func.func @transform_3(%arg0: i32, %arg1: i32) -> (i32, i32) {
    %c0_i32 = arith.constant 0 : i32
    %c0_i32_0 = arith.constant 0 : i32
    return %arg0, %c0_i32 : i32, i32
  }
  func.func @transform_4(%arg0: i32, %arg1: i32) -> (i32, i32) {
    %c0_i32 = arith.constant 0 : i32
    %c0_i32_0 = arith.constant 0 : i32
    return %arg0, %c0_i32 : i32, i32
  }
  func.func @transform_5(%arg0: i32, %arg1: i32) -> (i32, i32, i32) {
    %c0_i32 = arith.constant 0 : i32
    %c0_i32_0 = arith.constant 0 : i32
    return %arg1, %arg0, %c0_i32 : i32, i32, i32
  }
}

</mosaic_0001>

<bundles_post_ra>
// kernel: tpu_custom_call.1
= control target key start
LH: loop header
LB: loop body
LE: loop exit
PB: predicated region body
PF: predicated region fallthrough
CT: control target
= control target key end

     0   :  { %s755_s18 = smov 0   ;;  %s757_s19 = smov 0   ;;  %s881_s0 = inlined_call_operand.vmem [shape: f32[2,32,8], index: 0, kind: input, shape index: {}]   ;;  %s882_s1 = inlined_call_operand.vmem [shape: f32[2,32,8], index: 1, kind: input, shape index: {}]   ;;  %s883_s2 = inlined_call_operand.vmem [shape: f32[2,1,8], index: 2, kind: input, shape index: {}]   ;;  %s884_s3 = inlined_call_operand.vmem [shape: f32[64,32], index: 3, kind: input, shape index: {}]   ;;  %s885_s4 = inlined_call_operand.vmem [shape: f32[64,32], index: 4, kind: input, shape index: {}]   ;;  %s886_s5 = inlined_call_operand.vmem [shape: f32[2,64,8], index: 5, kind: output, shape index: {}]  }
   0x1   :  { %s759_s20 = smov 0  }
   0x2 LB: > { %s24_s21 = sadd.s32 1, %s719_s19  ;;  %p641_p0 = scmp.ge.s32.totalorder %s723_s20, 1  ;;  %s723_s20 = sphi %s759_s20, %s15_s20   ;;  %s719_s19 = sphi %s757_s19, %s888_s19   ;;  %s715_s18 = sphi %s755_s18, %s887_s18  }
   0x3   : > { %p25_p1 = scmp.ge.s32.totalorder %s24_s21, 2  ;;  %p241_p2 = scmp.lt.s32.totalorder %s723_s20, 3 }
   0x5   : > { %s890_s21 = smov (%p25_p1, %s24_s21), 0  ;;  %p242_p3 = pnand %p641_p0, %p241_p2 }
   0x6   : > { %p291_p4 = scmp.lt.s32.totalorder (!%p242_p3), %s715_s18, 1 }
   0x7   : > { %245 = sbr.rel (%p242_p3) target bundleno = 185 (0xb9), region = 40 }
   0xc   : > { %s892_s18 = smov (!%p291_p4, %s715_s18), 1  ;;  %v342_v8 = vld [vmem:[%s885_s4 + $0x20] sm:$0xff]  ;;  %vm350_vm0 = vcmask 261120   ;;  %v343_v12 = vld [vmem:[%s885_s4 + $0x28] sm:$0xff]  ;;  %v344_v16 = vld [vmem:[%s885_s4 + $0x30] sm:$0xff]  ;;  %vm494_vm1 = vcmask 64512  }
   0xd   : > { %s666_s22 = sshll.u32 %s892_s18, 5  ;;  %v330_v9 = vld [vmem:[%s884_s3 + $0x20] sm:$0xff]  ;;  %v331_v13 = vld [vmem:[%s884_s3 + $0x28] sm:$0xff]  ;;  %v332_v17 = vld [vmem:[%s884_s3 + $0x30] sm:$0xff]  ;;  %s303_s17 = scalar_lea.vmem %s883_s2, %s892_s18 }
   0xe   : > { %s300_s25 = scalar_lea.vmem %s882_s1, %s666_s22  ;;  %s295_s28 = scalar_lea.vmem %s881_s0, %s666_s22  ;;  %v338_v10 = vld [vmem:[%s885_s4] sm:$0xff]  ;;  %v339_v14 = vld [vmem:[%s885_s4 + $0x8] sm:$0xff]  ;;  %v340_v18 = vld [vmem:[%s885_s4 + $0x10] sm:$0xff] }
   0xf   : > { %v349_v0 = vld [vmem:[%s300_s25 + $0x18] sm:$0xff]  ;;  %v348_v1 = vld [vmem:[%s300_s25 + $0x10] sm:$0xff]  ;;  %v347_v4 = vld [vmem:[%s300_s25 + $0x8] sm:$0xff]  ;;  %s668_s22 = sshll.u32 %s892_s18, 6 }
  0x10   : > { %669 = vmatpush.msra.mxu2 %v349_v0  ;;  %v337_v2 = vld [vmem:[%s295_s28 + $0x18] sm:$0xff]  ;;  %v336_v3 = vld [vmem:[%s295_s28 + $0x10] sm:$0xff]  ;;  %387 = vmatpush.msra.mxu0 %v349_v0  ;;  %v335_v5 = vld [vmem:[%s295_s28 + $0x8] sm:$0xff] }
  0x11   : > { %673 = vmatpush.msra.mxu3 %v337_v2  ;;  %452 = vmatpush.msra.mxu1 %v337_v2  ;;  %v346_v6 = vld [vmem:[%s300_s25] sm:$0xff]  ;;  %v327_v15 = vld [vmem:[%s884_s3 + $0x8] sm:$0xff]  ;;  %v328_v19 = vld [vmem:[%s884_s3 + $0x10] sm:$0xff]  ;;  %s854_s25 = scalar_lea.vmem %s886_s5, %s668_s22 }
  0x12   : > { %670 = vmatpush.msra.mxu2 %v348_v1  ;;  %388 = vmatpush.msra.mxu0 %v348_v1  ;;  %v334_v7 = vld [vmem:[%s295_s28] sm:$0xff]  ;;  %v345_v20 = vld [vmem:[%s885_s4 + $0x38] sm:$0xff] }
  0x13   : > { %674 = vmatpush.msra.mxu3 %v336_v3  ;;  %453 = vmatpush.msra.mxu1 %v336_v3  ;;  %v326_v11 = vld [vmem:[%s884_s3] sm:$0xff]  ;;  %v333_v21 = vld [vmem:[%s884_s3 + $0x38] sm:$0xff] }
  0x14   : > { %671 = vmatpush.msra.mxu2 %v347_v4  ;;  %389 = vmatpush.msra.mxu0 %v347_v4  ;;  %v341_v22 = vld [vmem:[%s885_s4 + $0x18] sm:$0xff]  ;;  %v481_v24 = vld [vmem:[%s303_s17] sm:$0x1] }
  0x15   : > { %675 = vmatpush.msra.mxu3 %v335_v5  ;;  %454 = vmatpush.msra.mxu1 %v335_v5  ;;  %v329_v23 = vld [vmem:[%s884_s3 + $0x18] sm:$0xff]  ;;  %v482_v25 = vmul.f32 0.015625, %v481_v24 }
  0x16   : > { %672 = vmatpush.msra.mxu2 %v346_v6  ;;  %390 = vmatpush.msra.mxu0 %v346_v6 }
  0x17   : > { %676 = vmatpush.msra.mxu3 %v334_v7  ;;  %652 = vmatmul.msk.f32.vlgmr.msra.gmra.mxu2 %vm350_vm0, %v342_v8  ;;  %v484_v26 = vperm.slane %v482_v25, 0 }
  0x18   : > { %660 = vmatmul.msk.f32.vlgmr.msra.gmra.mxu3 %vm350_vm0, %v330_v9  ;;  %455 = vmatpush.msra.mxu1 %v334_v7 }
  0x19   : > { %648 = vmatmul.msk.f32.vlgmr.msra.gmra.mxu0 %vm350_vm0, %v338_v10  ;;  %656 = vmatmul.msk.f32.vlgmr.msra.gmra.mxu1 %vm350_vm0, %v326_v11 }
  0x1f   : > { %653 = vmatmul.msk.f32.gmra.mxu2 %vm350_vm0, %v343_v12 }
  0x20   : > { %661 = vmatmul.msk.f32.gmra.mxu3 %vm350_vm0, %v331_v13 }
  0x21   : > { %649 = vmatmul.msk.f32.gmra.mxu0 %vm350_vm0, %v339_v14  ;;  %657 = vmatmul.msk.f32.gmra.mxu1 %vm350_vm0, %v327_v15 }
  0x27   : > { %654 = vmatmul.msk.f32.gmra.mxu2 %vm350_vm0, %v344_v16 }
  0x28   : > { %662 = vmatmul.msk.f32.gmra.mxu3 %vm350_vm0, %v332_v17 }
  0x29   : > { %650 = vmatmul.msk.f32.gmra.mxu0 %vm350_vm0, %v340_v18  ;;  %658 = vmatmul.msk.f32.gmra.mxu1 %vm350_vm0, %v328_v19 }
  0x2f   : > { %655 = vmatmul.msk.f32.gmra.mxu2 %vm350_vm0, %v345_v20 }
  0x30   : > { %663 = vmatmul.msk.f32.gmra.mxu3 %vm350_vm0, %v333_v21 }
  0x31   : > { %651 = vmatmul.msk.f32.gmra.mxu0 %vm350_vm0, %v341_v22  ;;  %659 = vmatmul.msk.f32.gmra.mxu1 %vm350_vm0, %v329_v23 }
  0x96   : > { %v392_v27 = vpop.f32.mrf.mxu0  ;;  %v457_v28 = vpop.f32.mrf.mxu1 }
  0x97   : > { %v458_v29 = vadd.f32 %v457_v28, %v392_v27 }
  0x99   : > { %v486_v30 = vadd.f32 %v484_v26, %v458_v29 }
  0x9a   : > { %v404_v31 = vpop.f32.mrf.mxu2 }
  0x9b   : > { %495 = vst.msk [vmem:[%s854_s25] sm:$0xff] %vm494_vm1, %v486_v30  ;;  %v469_v32 = vpop.f32.mrf.mxu3 }
  0x9c   : > { %v470_v33 = vadd.f32 %v469_v32, %v404_v31 }
  0x9e   : > { %v490_v34 = vadd.f32 %v484_v26, %v470_v33  ;;  %v395_v35 = vpop.f32.mrf.mxu0  ;;  %v460_v36 = vpop.f32.mrf.mxu1 }
  0x9f   : > { %v461_v37 = vadd.f32 %v460_v36, %v395_v35 }
  0xa0   : > { %499 = vst.msk [vmem:[%s854_s25 + $0x20] sm:$0xff] %vm494_vm1, %v490_v34 }
  0xa1   : > { %v487_v38 = vadd.f32 %v484_v26, %v461_v37 }
  0xa2   : > { %v407_v39 = vpop.f32.mrf.mxu2 }
  0xa3   : > { %496 = vst.msk [vmem:[%s854_s25 + $0x8] sm:$0xff] %vm494_vm1, %v487_v38  ;;  %v472_v40 = vpop.f32.mrf.mxu3 }
  0xa4   : > { %v473_v41 = vadd.f32 %v472_v40, %v407_v39 }
  0xa6   : > { %v491_v42 = vadd.f32 %v484_v26, %v473_v41  ;;  %v398_v43 = vpop.f32.mrf.mxu0  ;;  %v463_v44 = vpop.f32.mrf.mxu1 }
  0xa7   : > { %v464_v45 = vadd.f32 %v463_v44, %v398_v43 }
  0xa8   : > { %500 = vst.msk [vmem:[%s854_s25 + $0x28] sm:$0xff] %vm494_vm1, %v491_v42 }
  0xa9   : > { %v488_v46 = vadd.f32 %v484_v26, %v464_v45 }
  0xaa   : > { %v410_v47 = vpop.f32.mrf.mxu2 }
  0xab   : > { %497 = vst.msk [vmem:[%s854_s25 + $0x10] sm:$0xff] %vm494_vm1, %v488_v46  ;;  %v475_v48 = vpop.f32.mrf.mxu3 }
  0xac   : > { %v476_v49 = vadd.f32 %v475_v48, %v410_v47 }
  0xae   : > { %v492_v50 = vadd.f32 %v484_v26, %v476_v49  ;;  %v401_v51 = vpop.f32.mrf.mxu0  ;;  %v466_v52 = vpop.f32.mrf.mxu1 }
  0xaf   : > { %v467_v53 = vadd.f32 %v466_v52, %v401_v51 }
  0xb0   : > { %501 = vst.msk [vmem:[%s854_s25 + $0x30] sm:$0xff] %vm494_vm1, %v492_v50 }
  0xb1   : > { %v489_v54 = vadd.f32 %v484_v26, %v467_v53 }
  0xb2   : > { %v413_v55 = vpop.f32.mrf.mxu2 }
  0xb3   : > { %498 = vst.msk [vmem:[%s854_s25 + $0x18] sm:$0xff] %vm494_vm1, %v489_v54  ;;  %v478_v56 = vpop.f32.mrf.mxu3 }
  0xb4   : > { %v479_v57 = vadd.f32 %v478_v56, %v413_v55 }
  0xb6   : > { %v493_v58 = vadd.f32 %v484_v26, %v479_v57 }
  0xb8   : > { %502 = vst.msk [vmem:[%s854_s25 + $0x38] sm:$0xff] %vm494_vm1, %v493_v58 }
  0xb9 PF: > { %s15_s20 = sadd.s32 1, %s723_s20   ;;  %s887_s18 = smov %s719_s19 }
  0xba   : > { %p12_p5 = scmp.ge.s32.totalorder %s15_s20, 4   ;;  %s888_s19 = smov %s890_s21 }
  0xbc   :  { %14 = sbr.rel (!%p12_p5) target bundleno = 2 (0x2), region = 82 }

</bundles_post_ra>
